<compile_context>
chip_gen: v5e
topology: v5e:2x2
jax: 0.10.0
libtpu: 0.0.40
codegen_flags: <defaults>
</compile_context>

<pallas_src>
import functools

import jax
import jax.numpy as jnp
from jax.experimental import pallas as pl
from jax.experimental.pallas import tpu as pltpu


def basic_block_kernel(x_ref, w1_ref, w2_ref, b1_ref, b2_ref, o_ref, *, img_h):
    # x_ref  : (R, WC)     f32   lane-dense activations, R = batch_tile*img_h rows
    #                            (batch folded into the matmul M dimension), WC = W*C = 128
    # w*_ref : (3, WC, WC) bf16  banded conv weights per kh tap (kw taps + channel
    #                            contraction folded into each (WC, WC) band, BN scale folded)
    # b*_ref : (1, WC)     f32   folded BN bias, tiled across W
    # o_ref  : (R, WC)           lane-dense output
    R = x_ref.shape[0]
    WC = x_ref.shape[1]

    x = x_ref[...]                                              # (R, WC) f32

    # Row index *within each image*; masks keep the sublane rolls from wrapping rows
    # across image (batch-fold) boundaries.
    row = jax.lax.broadcasted_iota(jnp.int32, (R, WC), 0) % img_h
    top = row == 0
    bot = row == img_h - 1

    def conv_bn(v, w_ref, b_ref):
        # Stride-1 / padding-1 3x3 conv as three accumulating K=WC MXU matmuls (one per
        # kh tap).  Row halo via XLU sublane rolls, zero-masked at image boundaries.
        # On v6e a single K=3*WC concat matmul is marginally better MXU-wise; the 3-matmul
        # form wins on v5e/v7x and avoids the (R, 3*WC) bf16 temp.
        up = jnp.where(top, 0.0, pltpu.roll(v, 1, axis=0)).astype(jnp.bfloat16)        # v[h-1]
        mid = v.astype(jnp.bfloat16)                                                   # v[h]
        down = jnp.where(bot, 0.0, pltpu.roll(v, R - 1, axis=0)).astype(jnp.bfloat16)  # v[h+1]
        acc = jnp.dot(up, w_ref[0], preferred_element_type=jnp.float32)
        acc = acc + jnp.dot(mid, w_ref[1], preferred_element_type=jnp.float32)
        acc = acc + jnp.dot(down, w_ref[2], preferred_element_type=jnp.float32)
        return acc + b_ref[...]                                 # folded BN bias (f32 VPU)

    out1 = jnp.maximum(conv_bn(x, w1_ref, b1_ref), 0.0)         # conv1 -> BN1 -> ReLU
    out2 = conv_bn(out1, w2_ref, b2_ref) + x                    # conv2 -> BN2 -> +residual
    o_ref[...] = jnp.maximum(out2, 0.0).astype(o_ref.dtype)     # final ReLU


def _banded_conv_weights(w_hwio, W):
    """(3, 3, Cin, Cout) HWIO -> (3, W*Cin, W*Cout) stack of per-kh banded matrices.

    band[kh][w'*Cin + ci, w*Cout + co] = w[kh, w' - w + 1, ci, co] (0 outside the 3-tap band),
    so  sum_kh (row-shifted activations)[kh] @ band[kh]  is exactly a stride-1, padding-1
    3x3 convolution in the lane-dense (rows, W*C) layout.

    TODO(synk): this O(W^2*Cin*Cout) weight only works at toy widths (W*Cin = 128 here); at
    real ResNet widths (e.g. C=64, W=56 -> ~73 MiB) switch to W-tiled K=3*Cin / 9*Cin
    im2col-style weights (~72 KiB) and 256-aligned M/N/K tiles on v6e/v7x (128 on v5e).
    """
    KH, KW, Cin, Cout = w_hwio.shape
    wp = jnp.arange(W)[:, None]            # input column  w'
    wq = jnp.arange(W)[None, :]            # output column w
    kw = wp - wq + 1                       # tap index
    valid = (kw >= 0) & (kw < KW)
    kw_c = jnp.clip(kw, 0, KW - 1)
    bands = []
    for kh in range(KH):
        taps = w_hwio[kh][kw_c]                                    # (W, W, Cin, Cout)
        taps = jnp.where(valid[:, :, None, None], taps, 0.0)
        bands.append(jnp.transpose(taps, (0, 2, 1, 3)).reshape(W * Cin, W * Cout))
    return jnp.stack(bands, axis=0)                                # (KH, W*Cin, W*Cout)


def basic_block_forward(x_nchw, w1_hwio, w2_hwio, s1, b1, s2, b2, *, batch_tile=None):
    """x_nchw: (N, C, H, W) f32; conv weights HWIO; s*/b* = folded eval-mode BN. NCHW out.

    batch_tile: images per grid step.  Default None folds the whole batch into one block
    (grid=(1,), best on single-TC v5e/v6e).  On v7x pass batch_tile=N//2 so both
    TensorCores get a 'parallel' grid step.
    """
    N, Cin, H, W = x_nchw.shape
    C = w1_hwio.shape[3]
    assert Cin == C, "BasicBlock with downsample=None requires inplanes == planes"
    WC = W * C
    if batch_tile is None:
        batch_tile = N
    assert N % batch_tile == 0
    R = batch_tile * H                       # rows per block (matmul M dim); multiple of 8
    n_steps = N // batch_tile

    # NCHW -> lane-dense (N*H, W*C): batch and rows folded into the matmul M dimension.
    # TODO(synk): if the surrounding model stays NHWC / (H, W*C) these two transposes (and
    # their HBM round trips) disappear entirely.
    x_ld = jnp.transpose(x_nchw, (0, 2, 3, 1)).reshape(N * H, WC)

    # Fold BN scale into conv output channels; build banded bf16 MXU weights per kh tap.
    bigw1 = _banded_conv_weights(w1_hwio * s1[None, None, None, :], W).astype(jnp.bfloat16)
    bigw2 = _banded_conv_weights(w2_hwio * s2[None, None, None, :], W).astype(jnp.bfloat16)
    b1t = jnp.tile(b1, W).reshape(1, WC).astype(jnp.float32)
    b2t = jnp.tile(b2, W).reshape(1, WC).astype(jnp.float32)

    # Advisory cost hint: 2 convs x (3 matmuls of M=N*H, K=WC, N=WC) + HBM bytes.
    flops = 2 * (2 * (N * H) * (3 * WC) * WC)
    bytes_accessed = 2 * (N * H * WC * 4) + 2 * (3 * WC * WC * 2) + 2 * (WC * 4)
    cost = pl.CostEstimate(flops=flops, transcendentals=0, bytes_accessed=bytes_accessed)

    kernel = functools.partial(basic_block_kernel, img_h=H)

    # TODO(synk): at real sizes single-buffer the grid-invariant weights
    # (pipeline_mode=pl.Buffered(1) or a one-shot make_async_copy stage) to halve weight
    # VMEM footprint on v7x's 64 MiB; irrelevant at 96 KiB per weight here.
    out_ld = pl.pallas_call(
        kernel,
        out_shape=jax.ShapeDtypeStruct((N * H, WC), x_nchw.dtype),
        grid_spec=pltpu.PrefetchScalarGridSpec(
            num_scalar_prefetch=0,
            grid=(n_steps,),
            in_specs=[
                pl.BlockSpec((R, WC), lambda i: (i, 0)),
                pl.BlockSpec((3, WC, WC), lambda i: (0, 0, 0)),
                pl.BlockSpec((3, WC, WC), lambda i: (0, 0, 0)),
                pl.BlockSpec((1, WC), lambda i: (0, 0)),
                pl.BlockSpec((1, WC), lambda i: (0, 0)),
            ],
            out_specs=pl.BlockSpec((R, WC), lambda i: (i, 0)),
        ),
        compiler_params=pltpu.CompilerParams(dimension_semantics=("parallel",)),
        cost_estimate=cost,
    )(x_ld, bigw1, bigw2, b1t, b2t)

    return jnp.transpose(out_ld.reshape(N, H, W, C), (0, 3, 1, 2))


def reference_forward(x_nchw, w1_hwio, w2_hwio, s1, b1, s2, b2):
    """Pure-JAX reference (NCHW in/out), mirrors the PyTorch forward (eval-mode BN)."""
    dn = ('NCHW', 'HWIO', 'NCHW')
    out = jax.lax.conv_general_dilated(x_nchw, w1_hwio, (1, 1), 'SAME', dimension_numbers=dn)
    out = out * s1[None, :, None, None] + b1[None, :, None, None]
    out = jnp.maximum(out, 0.0)
    out = jax.lax.conv_general_dilated(out, w2_hwio, (1, 1), 'SAME', dimension_numbers=dn)
    out = out * s2[None, :, None, None] + b2[None, :, None, None]
    return jnp.maximum(out + x_nchw, 0.0)


if __name__ == "__main__":
    key = jax.random.PRNGKey(0)
    kx, kw1, kw2, kg1, kb1, km1, kv1, kg2, kb2, km2, kv2 = jax.random.split(key, 11)

    N, C, H, W = 2, 8, 16, 16   # inplanes == planes == 8, stride=1, downsample=None; W*C = 128
    eps = 1e-5

    x = jax.random.normal(kx, (N, C, H, W), jnp.float32)
    w1 = jax.random.normal(kw1, (3, 3, C, C), jnp.float32) * 0.1
    w2 = jax.random.normal(kw2, (3, 3, C, C), jnp.float32) * 0.1

    # TODO(synk): BatchNorm is eval-mode (running stats folded into per-channel scale/bias);
    # train-mode batch statistics would need a cross-batch reduction pass.
    gamma1 = jax.random.uniform(kg1, (C,), jnp.float32, 0.5, 1.5)
    beta1 = jax.random.normal(kb1, (C,), jnp.float32) * 0.1
    mean1 = jax.random.normal(km1, (C,), jnp.float32) * 0.1
    var1 = jax.random.uniform(kv1, (C,), jnp.float32, 0.5, 1.5)
    gamma2 = jax.random.uniform(kg2, (C,), jnp.float32, 0.5, 1.5)
    beta2 = jax.random.normal(kb2, (C,), jnp.float32) * 0.1
    mean2 = jax.random.normal(km2, (C,), jnp.float32) * 0.1
    var2 = jax.random.uniform(kv2, (C,), jnp.float32, 0.5, 1.5)

    s1 = gamma1 / jnp.sqrt(var1 + eps)
    b1 = beta1 - mean1 * s1
    s2 = gamma2 / jnp.sqrt(var2 + eps)
    b2 = beta2 - mean2 * s2

    out = jax.block_until_ready(basic_block_forward(x, w1, w2, s1, b1, s2, b2))
    ref = reference_forward(x, w1, w2, s1, b1, s2, b2)

    assert out.shape == (N, C, H, W)
    # bf16 MXU operands -> compare against the f32 reference with a bf16-appropriate tolerance.
    assert jnp.allclose(out, ref, atol=5e-2, rtol=5e-2), \
        f"max abs err = {float(jnp.max(jnp.abs(out - ref)))}"

    print("KERNEL_OK")
</pallas_src>

<mosaic_0001>
module attributes {stable_mosaic.version = 11 : i64} {
  func.func @basic_block_kernel(%arg0: i32, %arg1: memref<32x128xf32, #tpu.memory_space<vmem>>, %arg2: memref<3x128x128xbf16, #tpu.memory_space<vmem>>, %arg3: memref<3x128x128xbf16, #tpu.memory_space<vmem>>, %arg4: memref<1x128xf32, #tpu.memory_space<vmem>>, %arg5: memref<1x128xf32, #tpu.memory_space<vmem>>, %arg6: memref<32x128xf32, #tpu.memory_space<vmem>>) attributes {dimension_semantics = [#tpu.dimension_semantics<parallel>], iteration_bounds = array<i64: 1>, scalar_prefetch = 0 : i64, scratch_operands = 0 : i64, tpu.core_type = #tpu.core_type<tc>, window_params = [{transform_indices = @transform_0, window_bounds = array<i64: 32, 128>}, {pipeline_mode = #tpu.pipeline_mode<synchronous>, transform_indices = @transform_1, window_bounds = array<i64: 3, 128, 128>}, {pipeline_mode = #tpu.pipeline_mode<synchronous>, transform_indices = @transform_2, window_bounds = array<i64: 3, 128, 128>}, {pipeline_mode = #tpu.pipeline_mode<synchronous>, transform_indices = @transform_3, window_bounds = array<i64: 1, 128>}, {pipeline_mode = #tpu.pipeline_mode<synchronous>, transform_indices = @transform_4, window_bounds = array<i64: 1, 128>}, {transform_indices = @transform_5, window_bounds = array<i64: 32, 128>}]} {
    %c0 = arith.constant 0 : index
    %c0_0 = arith.constant 0 : index
    %0 = vector.load %arg1[%c0, %c0_0] : memref<32x128xf32, #tpu.memory_space<vmem>>, vector<32x128xf32>
    %1 = tpu.iota {dimensions = array<i32: 0>} : vector<32x128xi32>
    %c16_i32 = arith.constant 16 : i32
    %c0_i32 = arith.constant 0 : i32
    %2 = arith.cmpi eq, %c16_i32, %c0_i32 : i32
    %c1_i32 = arith.constant 1 : i32
    %3 = arith.select %2, %c1_i32, %c16_i32 : i32
    %4 = vector.broadcast %3 : i32 to vector<32x128xi32>
    %5 = arith.remsi %1, %4 : vector<32x128xi32>
    %c0_i32_1 = arith.constant 0 : i32
    %6 = vector.broadcast %c0_i32_1 : i32 to vector<32x128xi32>
    %7 = arith.cmpi ne, %5, %6 : vector<32x128xi32>
    %c0_i32_2 = arith.constant 0 : i32
    %8 = vector.broadcast %c0_i32_2 : i32 to vector<32x128xi32>
    %9 = arith.cmpi slt, %5, %8 : vector<32x128xi32>
    %c0_i32_3 = arith.constant 0 : i32
    %10 = arith.cmpi slt, %3, %c0_i32_3 : i32
    %11 = vector.broadcast %10 : i1 to vector<32x128xi1>
    %12 = vector.broadcast %11 : vector<32x128xi1> to vector<32x128xi1>
    %13 = arith.xori %9, %12 : vector<32x128xi1>
    %14 = arith.andi %13, %7 : vector<32x128xi1>
    %15 = vector.broadcast %3 : i32 to vector<32x128xi32>
    %16 = arith.addi %5, %15 : vector<32x128xi32>
    %17 = arith.select %14, %16, %5 : vector<32x128xi1>, vector<32x128xi32>
    %c0_i32_4 = arith.constant 0 : i32
    %18 = vector.broadcast %c0_i32_4 : i32 to vector<32x128xi32>
    %19 = arith.cmpi eq, %17, %18 : vector<32x128xi32>
    %c15_i32 = arith.constant 15 : i32
    %20 = vector.broadcast %c15_i32 : i32 to vector<32x128xi32>
    %21 = arith.cmpi eq, %17, %20 : vector<32x128xi32>
    %c1_i32_5 = arith.constant 1 : i32
    %22 = tpu.dynamic_rotate %0 by %c1_i32_5 dim 0 : vector<32x128xf32>, i32 -> vector<32x128xf32>
    %cst = arith.constant 0.000000e+00 : f32
    %23 = vector.broadcast %cst : f32 to vector<32x128xf32>
    %24 = arith.select %19, %23, %22 : vector<32x128xi1>, vector<32x128xf32>
    %25 = arith.truncf %24 : vector<32x128xf32> to vector<32x128xbf16>
    %26 = arith.truncf %0 : vector<32x128xf32> to vector<32x128xbf16>
    %c31_i32 = arith.constant 31 : i32
    %27 = tpu.dynamic_rotate %0 by %c31_i32 dim 0 : vector<32x128xf32>, i32 -> vector<32x128xf32>
    %cst_6 = arith.constant 0.000000e+00 : f32
    %28 = vector.broadcast %cst_6 : f32 to vector<32x128xf32>
    %29 = arith.select %21, %28, %27 : vector<32x128xi1>, vector<32x128xf32>
    %30 = arith.truncf %29 : vector<32x128xf32> to vector<32x128xbf16>
    %c0_7 = arith.constant 0 : index
    %c0_8 = arith.constant 0 : index
    %c0_9 = arith.constant 0 : index
    %31 = vector.load %arg2[%c0_7, %c0_8, %c0_9] : memref<3x128x128xbf16, #tpu.memory_space<vmem>>, vector<1x128x128xbf16>
    %32 = vector.shape_cast %31 : vector<1x128x128xbf16> to vector<128x128xbf16>
    %cst_10 = arith.constant dense<0.000000e+00> : vector<32x128xf32>
    %33 = tpu.matmul %25, %32, %cst_10 {dimension_numbers = #tpu.dot_dimension_numbers<[1], [0], [0], [1], [0, 0, 1, 1], [], []>} : vector<32x128xbf16>, vector<128x128xbf16>, vector<32x128xf32> -> vector<32x128xf32>
    %c1 = arith.constant 1 : index
    %c0_11 = arith.constant 0 : index
    %c0_12 = arith.constant 0 : index
    %34 = vector.load %arg2[%c1, %c0_11, %c0_12] : memref<3x128x128xbf16, #tpu.memory_space<vmem>>, vector<1x128x128xbf16>
    %35 = vector.shape_cast %34 : vector<1x128x128xbf16> to vector<128x128xbf16>
    %cst_13 = arith.constant dense<0.000000e+00> : vector<32x128xf32>
    %36 = tpu.matmul %26, %35, %cst_13 {dimension_numbers = #tpu.dot_dimension_numbers<[1], [0], [0], [1], [0, 0, 1, 1], [], []>} : vector<32x128xbf16>, vector<128x128xbf16>, vector<32x128xf32> -> vector<32x128xf32>
    %37 = arith.addf %33, %36 : vector<32x128xf32>
    %c2 = arith.constant 2 : index
    %c0_14 = arith.constant 0 : index
    %c0_15 = arith.constant 0 : index
    %38 = vector.load %arg2[%c2, %c0_14, %c0_15] : memref<3x128x128xbf16, #tpu.memory_space<vmem>>, vector<1x128x128xbf16>
    %39 = vector.shape_cast %38 : vector<1x128x128xbf16> to vector<128x128xbf16>
    %cst_16 = arith.constant dense<0.000000e+00> : vector<32x128xf32>
    %40 = tpu.matmul %30, %39, %cst_16 {dimension_numbers = #tpu.dot_dimension_numbers<[1], [0], [0], [1], [0, 0, 1, 1], [], []>} : vector<32x128xbf16>, vector<128x128xbf16>, vector<32x128xf32> -> vector<32x128xf32>
    %41 = arith.addf %37, %40 : vector<32x128xf32>
    %c0_17 = arith.constant 0 : index
    %c0_18 = arith.constant 0 : index
    %42 = vector.load %arg4[%c0_17, %c0_18] : memref<1x128xf32, #tpu.memory_space<vmem>>, vector<1x128xf32>
    %43 = vector.broadcast %42 : vector<1x128xf32> to vector<32x128xf32>
    %44 = arith.addf %41, %43 : vector<32x128xf32>
    %cst_19 = arith.constant 0.000000e+00 : f32
    %45 = vector.broadcast %cst_19 : f32 to vector<32x128xf32>
    %46 = arith.maximumf %44, %45 : vector<32x128xf32>
    %c1_i32_20 = arith.constant 1 : i32
    %47 = tpu.dynamic_rotate %46 by %c1_i32_20 dim 0 : vector<32x128xf32>, i32 -> vector<32x128xf32>
    %cst_21 = arith.constant 0.000000e+00 : f32
    %48 = vector.broadcast %cst_21 : f32 to vector<32x128xf32>
    %49 = arith.select %19, %48, %47 : vector<32x128xi1>, vector<32x128xf32>
    %50 = arith.truncf %49 : vector<32x128xf32> to vector<32x128xbf16>
    %51 = arith.truncf %46 : vector<32x128xf32> to vector<32x128xbf16>
    %c31_i32_22 = arith.constant 31 : i32
    %52 = tpu.dynamic_rotate %46 by %c31_i32_22 dim 0 : vector<32x128xf32>, i32 -> vector<32x128xf32>
    %cst_23 = arith.constant 0.000000e+00 : f32
    %53 = vector.broadcast %cst_23 : f32 to vector<32x128xf32>
    %54 = arith.select %21, %53, %52 : vector<32x128xi1>, vector<32x128xf32>
    %55 = arith.truncf %54 : vector<32x128xf32> to vector<32x128xbf16>
    %c0_24 = arith.constant 0 : index
    %c0_25 = arith.constant 0 : index
    %c0_26 = arith.constant 0 : index
    %56 = vector.load %arg3[%c0_24, %c0_25, %c0_26] : memref<3x128x128xbf16, #tpu.memory_space<vmem>>, vector<1x128x128xbf16>
    %57 = vector.shape_cast %56 : vector<1x128x128xbf16> to vector<128x128xbf16>
    %cst_27 = arith.constant dense<0.000000e+00> : vector<32x128xf32>
    %58 = tpu.matmul %50, %57, %cst_27 {dimension_numbers = #tpu.dot_dimension_numbers<[1], [0], [0], [1], [0, 0, 1, 1], [], []>} : vector<32x128xbf16>, vector<128x128xbf16>, vector<32x128xf32> -> vector<32x128xf32>
    %c1_28 = arith.constant 1 : index
    %c0_29 = arith.constant 0 : index
    %c0_30 = arith.constant 0 : index
    %59 = vector.load %arg3[%c1_28, %c0_29, %c0_30] : memref<3x128x128xbf16, #tpu.memory_space<vmem>>, vector<1x128x128xbf16>
    %60 = vector.shape_cast %59 : vector<1x128x128xbf16> to vector<128x128xbf16>
    %cst_31 = arith.constant dense<0.000000e+00> : vector<32x128xf32>
    %61 = tpu.matmul %51, %60, %cst_31 {dimension_numbers = #tpu.dot_dimension_numbers<[1], [0], [0], [1], [0, 0, 1, 1], [], []>} : vector<32x128xbf16>, vector<128x128xbf16>, vector<32x128xf32> -> vector<32x128xf32>
    %62 = arith.addf %58, %61 : vector<32x128xf32>
    %c2_32 = arith.constant 2 : index
    %c0_33 = arith.constant 0 : index
    %c0_34 = arith.constant 0 : index
    %63 = vector.load %arg3[%c2_32, %c0_33, %c0_34] : memref<3x128x128xbf16, #tpu.memory_space<vmem>>, vector<1x128x128xbf16>
    %64 = vector.shape_cast %63 : vector<1x128x128xbf16> to vector<128x128xbf16>
    %cst_35 = arith.constant dense<0.000000e+00> : vector<32x128xf32>
    %65 = tpu.matmul %55, %64, %cst_35 {dimension_numbers = #tpu.dot_dimension_numbers<[1], [0], [0], [1], [0, 0, 1, 1], [], []>} : vector<32x128xbf16>, vector<128x128xbf16>, vector<32x128xf32> -> vector<32x128xf32>
    %66 = arith.addf %62, %65 : vector<32x128xf32>
    %c0_36 = arith.constant 0 : index
    %c0_37 = arith.constant 0 : index
    %67 = vector.load %arg5[%c0_36, %c0_37] : memref<1x128xf32, #tpu.memory_space<vmem>>, vector<1x128xf32>
    %68 = vector.broadcast %67 : vector<1x128xf32> to vector<32x128xf32>
    %69 = arith.addf %66, %68 : vector<32x128xf32>
    %70 = arith.addf %69, %0 : vector<32x128xf32>
    %cst_38 = arith.constant 0.000000e+00 : f32
    %71 = vector.broadcast %cst_38 : f32 to vector<32x128xf32>
    %72 = arith.maximumf %70, %71 : vector<32x128xf32>
    %c0_39 = arith.constant 0 : index
    %c0_40 = arith.constant 0 : index
    %73 = vector.load %arg6[%c0_39, %c0_40] : memref<32x128xf32, #tpu.memory_space<vmem>>, vector<32x128xf32>
    tpu.vector_store %arg6[%c0_39, %c0_40], %72 {strides = array<i32>} : memref<32x128xf32, #tpu.memory_space<vmem>>, vector<32x128xf32>,
    return
  }
  func.func @transform_0(%arg0: i32) -> (i32, i32) {
    %c0_i32 = arith.constant 0 : i32
    %c0_i32_0 = arith.constant 0 : i32
    return %arg0, %c0_i32 : i32, i32
  }
  func.func @transform_1(%arg0: i32) -> (i32, i32, i32) {
    %c0_i32 = arith.constant 0 : i32
    %c0_i32_0 = arith.constant 0 : i32
    %c0_i32_1 = arith.constant 0 : i32
    %c0_i32_2 = arith.constant 0 : i32
    return %c0_i32, %c0_i32_0, %c0_i32_1 : i32, i32, i32
  }
  func.func @transform_2(%arg0: i32) -> (i32, i32, i32) {
    %c0_i32 = arith.constant 0 : i32
    %c0_i32_0 = arith.constant 0 : i32
    %c0_i32_1 = arith.constant 0 : i32
    %c0_i32_2 = arith.constant 0 : i32
    return %c0_i32, %c0_i32_0, %c0_i32_1 : i32, i32, i32
  }
  func.func @transform_3(%arg0: i32) -> (i32, i32) {
    %c0_i32 = arith.constant 0 : i32
    %c0_i32_0 = arith.constant 0 : i32
    %c0_i32_1 = arith.constant 0 : i32
    return %c0_i32, %c0_i32_0 : i32, i32
  }
  func.func @transform_4(%arg0: i32) -> (i32, i32) {
    %c0_i32 = arith.constant 0 : i32
    %c0_i32_0 = arith.constant 0 : i32
    %c0_i32_1 = arith.constant 0 : i32
    return %c0_i32, %c0_i32_0 : i32, i32
  }
  func.func @transform_5(%arg0: i32) -> (i32, i32) {
    %c0_i32 = arith.constant 0 : i32
    %c0_i32_0 = arith.constant 0 : i32
    return %arg0, %c0_i32 : i32, i32
  }
}

</mosaic_0001>

<bundles_post_ra>
// kernel: tpu_custom_call.1
= control target key start
LH: loop header
LB: loop body
LE: loop exit
PB: predicated region body
PF: predicated region fallthrough
CT: control target
= control target key end

     0   :  { %10 = vsyncpa [#allocation3], 0  ;;  %s1325_s0 = inlined_call_operand.hbm [shape: f32[32,128], index: 0, kind: input, shape index: {}]   ;;  %s1326_s1 = inlined_call_operand.hbm [shape: bf16[3,128,128], index: 1, kind: input, shape index: {}]   ;;  %s1327_s2 = inlined_call_operand.hbm [shape: bf16[3,128,128], index: 2, kind: input, shape index: {}]   ;;  %s1328_s3 = inlined_call_operand.vmem [shape: f32[1,128], index: 3, kind: input, shape index: {}]   ;;  %s1329_s4 = inlined_call_operand.vmem [shape: f32[1,128], index: 4, kind: input, shape index: {}]   ;;  %s1330_s5 = inlined_call_operand.hbm [shape: f32[32,128], index: 5, kind: output, shape index: {}]  }
   0x1   :  { %11 = vsyncpa [#allocation6], 0  ;;  %s30_s20 = sshll.u32 %s1326_s1, 4  ;;  %s31_s20 = int_to_ptr.hbm [resolvable:$true] %s30_s20 }
   0x2   :  { %12 = vsyncpa [#allocation4], 0  ;;  %s1162_s21 = smov [#allocation5]   ;;  %s17_s25 = sshll.u32 %s1325_s0, 4  ;;  %s18_s25 = int_to_ptr.hbm [resolvable:$true] %s17_s25 }
   0x3   :  { %s32_s22 = sshll.u32 %s1162_s21, 4  ;;  %s1163_s26 = smov 64   ;;  %s33_s22 = int_to_ptr.vmem [resolvable:$true] %s32_s22 }
   0x4   :  { %s1164_s27 = smov 4   ;;  %s1165_s28 = smov [#allocation2]  }
   0x5   :  { %38 = dma.hbm_to_vmem [thread:$0]  %s31_s20, 3072, %s33_s22, [#allocation6], %s1163_s26, %s1163_s26, %s1164_s27  }
   0x6   :  { %s19_s29 = sshll.u32 %s1165_s28, 4  ;;  %s1166_s30 = smov 128   ;;  %s20_s29 = int_to_ptr.vmem [resolvable:$true] %s19_s29 }
   0x7   :  { %s1167_s6 = smov 8   ;;  %s43_s8 = sshll.u32 %s1327_s2, 4  ;;  %s44_s8 = int_to_ptr.hbm [resolvable:$true] %s43_s8 }
   0x8   :  { %25 = dma.hbm_to_vmem [thread:$0]  %s18_s25, 512, %s20_s29, [#allocation3], %s1166_s30, %s1166_s30, %s1167_s6  }
   0x9   :  { %s1168_s9 = smov [#allocation7]  }
   0xa   :  { %s45_s0 = sshll.u32 %s1168_s9, 4  ;;  %s46_s0 = int_to_ptr.vmem [resolvable:$true] %s45_s0 }
   0xb   :  { %51 = dma.hbm_to_vmem [thread:$0]  %s44_s8, 3072, %s46_s0, [#allocation6], %s1163_s26, %s1163_s26, %s1164_s27  }
   0xc   :  { %1156 = dma.done.wait [#allocation3], 512  }
   0xd   :  { %1157 = vsyncadd [#allocation3], 4294966784 }
   0xe   :  { %1158 = dma.done.wait [#allocation6], 6144  }
   0xf   :  { %1159 = vsyncadd [#allocation6], 4294961152  ;;  %v996_v0 = vld [vmem:[#allocation5 + $0x78] sm:$0xff]  ;;  %v995_v3 = vld [vmem:[#allocation5 + $0x70] sm:$0xff]  ;;  %v72_v12 = vlaneseq  ;;  %vm1169_vm4 = vmmov 1   ;;  %s743_s15 = sshll.u32 %s1330_s5, 4  ;;  %s744_s15 = int_to_ptr.hbm [resolvable:$true] %s743_s15 }
  0x10   :  { %v988_v1 = vld [vmem:[#allocation5 + $0x38] sm:$0xff]  ;;  %246 = vmatpush.bf16.msra.mxu0 %v996_v0  ;;  %v987_v4 = vld [vmem:[#allocation5 + $0x30] sm:$0xff]  ;;  %v994_v6 = vld [vmem:[#allocation5 + $0x68] sm:$0xff] }
  0x11   :  { %v1004_v2 = vld [vmem:[#allocation5 + $0xb8] sm:$0xff]  ;;  %313 = vmatpush.bf16.msra.mxu1 %v988_v1  ;;  %v1003_v5 = vld [vmem:[#allocation5 + $0xb0] sm:$0xff]  ;;  %v986_v7 = vld [vmem:[#allocation5 + $0x28] sm:$0xff]  ;;  %v1213_v16 = vshrl.u32 %v72_v12, 7 }
  0x12   :  { %397 = vmatpush.bf16.msra.mxu2 %v1004_v2  ;;  %v1002_v8 = vld [vmem:[#allocation5 + $0xa8] sm:$0xff]  ;;  %v993_v9 = vld [vmem:[#allocation5 + $0x60] sm:$0xff]  ;;  %v992_v13 = vld [vmem:[#allocation5 + $0x58] sm:$0xff] }
  0x13   :  { %v985_v10 = vld [vmem:[#allocation5 + $0x20] sm:$0xff]  ;;  %v984_v14 = vld [vmem:[#allocation5 + $0x18] sm:$0xff]  ;;  %v991_v17 = vld [vmem:[#allocation5 + $0x50] sm:$0xff]  ;;  %v74_v25 = vadd.s32 8, %v1213_v16  ;;  %v81_v29 = vand.u32 15, %v1213_v16  ;;  %vm137_vm0 = vcmp.lt.s32.totalorder %v1213_v16, 1 }
  0x14   :  { %247 = vmatpush.bf16.msra.mxu0 %v995_v3  ;;  %v1001_v11 = vld [vmem:[#allocation5 + $0xa0] sm:$0xff]  ;;  %v1000_v15 = vld [vmem:[#allocation5 + $0x98] sm:$0xff]  ;;  %v983_v18 = vld [vmem:[#allocation5 + $0x10] sm:$0xff]  ;;  %vm154_vm1 = vcmp.lt.s32.totalorder %v1213_v16, 7  ;;  %v75_v50 = vadd.s32 16, %v1213_v16  ;;  %v76_v51 = vadd.s32 24, %v1213_v16 }
  0x15   :  { %314 = vmatpush.bf16.msra.mxu1 %v987_v4  ;;  %v999_v19 = vld [vmem:[#allocation5 + $0x90] sm:$0xff]  ;;  %v1020_v20 = vld [vmem:[#allocation7 + $0x78] sm:$0xff]  ;;  %v1215_v21 = vld [vmem:[#allocation2] sm:$0xff]  ;;  %v88_v37 = vand.u32 15, %v74_v25  ;;  %vm1029_vm2 = vcmp.ne.s32.totalorder %v81_v29, 0 }
  0x16   :  { %398 = vmatpush.bf16.msra.mxu2 %v1003_v5  ;;  %v1217_v22 = vld [vmem:[#allocation2 + $0x8] sm:$0xff]  ;;  %v1219_v23 = vld [vmem:[#allocation2 + $0x18] sm:$0xff]  ;;  %v1221_v24 = vld [vmem:[#allocation2 + $0x10] sm:$0xff]  ;;  %543 = vmatpush.bf16.msra.mxu3 %v1020_v20  ;;  %v133_v30 = vrot.slane %v1215_v21, 7  ;;  %v150_v34 = vrot.slane %v1215_v21, 1  ;;  %v95_v53 = vand.u32 15, %v75_v50 }
  0x17   :  { %v1019_v26 = vld [vmem:[#allocation7 + $0x70] sm:$0xff]  ;;  %v990_v27 = vld [vmem:[#allocation5 + $0x48] sm:$0xff]  ;;  %v134_v31 = vrot.slane %v1217_v22, 7  ;;  %v136_v32 = vrot.slane %v1219_v23, 7  ;;  %v151_v35 = vrot.slane %v1217_v22, 1  ;;  %v152_v36 = vrot.slane %v1221_v24, 1  ;;  %vm1244_vm5 = vmpackc.low %vm1169_vm4, %vm1029_vm2 }
  0x18   :  { %248 = vmatpush.bf16.msra.mxu0 %v994_v6  ;;  %v982_v28 = vld [vmem:[#allocation5 + $0x8] sm:$0xff]  ;;  %v989_v38 = vld [vmem:[#allocation5 + $0x40] sm:$0xff]  ;;  %vm1031_vm3 = vcmp.ne.s32.totalorder %v88_v37, 15  ;;  %v148_v45 = vpack.c.bf16 %v1217_v22, %v1215_v21  ;;  %v135_v52 = vrot.slane %v1221_v24, 7  ;;  %v153_v54 = vrot.slane %v1219_v23, 1  ;;  %v1028_v2 = vld [vmem:[#allocation7 + $0xb8] sm:$0xff] }
  0x19   :  { %315 = vmatpush.bf16.msra.mxu1 %v986_v7  ;;  %v998_v33 = vld [vmem:[#allocation5 + $0x88] sm:$0xff]  ;;  %v981_v39 = vld [vmem:[#allocation5] sm:$0xff]  ;;  %v140_v40 = vsel %vm137_vm0, %v133_v30, %v134_v31  ;;  %v141_v41 = vsel %vm137_vm0, %v136_v32, %v133_v30  ;;  %v156_v43 = vsel %vm154_vm1, %v151_v35, %v152_v36  ;;  %v157_v44 = vsel %vm154_vm1, %v150_v34, %v151_v35  ;;  %vm1249_vm6 = vmpackc.low %vm1031_vm3, %vm1169_vm4 }
  0x1a   :  { %399 = vmatpush.bf16.msra.mxu2 %v1002_v8  ;;  %544 = vmatpush.bf16.msra.mxu3 %v1019_v26  ;;  %v997_v42 = vld [vmem:[#allocation5 + $0x80] sm:$0xff]  ;;  %v823_v46 = vpack.c.bf16 %v140_v40, %v141_v41  ;;  %v863_v48 = vpack.c.bf16 %v156_v43, %v157_v44  ;;  %v102_v55 = vand.u32 15, %v76_v51  ;;  %v138_v56 = vsel %vm137_vm0, %v135_v52, %v136_v32  ;;  %v1018_v1 = vld [vmem:[#allocation7 + $0x68] sm:$0xff]  ;;  %v1027_v4 = vld [vmem:[#allocation7 + $0xb0] sm:$0xff] }
  0x1b   :  { %v139_v57 = vsel %vm137_vm0, %v134_v31, %v135_v52  ;;  %vm1030_vm7 = vcmp.ne.s32.totalorder %v95_v53, 0  ;;  %v155_v58 = vsel %vm154_vm1, %v152_v36, %v153_v54  ;;  %v158_v59 = vsel %vm154_vm1, %v153_v54, %v150_v34  ;;  %v1017_v3 = vld [vmem:[#allocation7 + $0x60] sm:$0xff]  ;;  %v1016_v5 = vld [vmem:[#allocation7 + $0x58] sm:$0xff]  ;;  %v1026_v7 = vld [vmem:[#allocation7 + $0xa8] sm:$0xff] }
  0x1c   :  { %249 = vmatpush.bf16.msra.mxu0 %v993_v9  ;;  %vm1032_vm8 = vcmp.ne.s32.totalorder %v102_v55, 15  ;;  %v149_v60 = vpack.c.bf16 %v1219_v23, %v1221_v24  ;;  %v827_v61 = vpack.c.bf16 %v138_v56, %v139_v57  ;;  %vm1272_vm9 = vmpackc.low %vm1169_vm4, %vm1030_vm7  ;;  %v867_v63 = vpack.c.bf16 %v158_v59, %v155_v58  ;;  %v1012_v6 = vld [vmem:[#allocation7 + $0x38] sm:$0xff]  ;;  %v1015_v8 = vld [vmem:[#allocation7 + $0x50] sm:$0xff] }
  0x1d   :  { %316 = vmatpush.bf16.msra.mxu1 %v985_v10  ;;  %vm1277_vm10 = vmpackc.low %vm1032_vm8, %vm1169_vm4  ;;  %v1011_v9 = vld [vmem:[#allocation7 + $0x30] sm:$0xff]  ;;  %v1025_v10 = vld [vmem:[#allocation7 + $0xa0] sm:$0xff] }
  0x1e   :  { %400 = vmatpush.bf16.msra.mxu2 %v1001_v11  ;;  %545 = vmatpush.bf16.msra.mxu3 %v1018_v1  ;;  %v1014_v11 = vld [vmem:[#allocation7 + $0x48] sm:$0xff]  ;;  %v1007_v20 = vld [vmem:[#allocation7 + $0x10] sm:$0xff]  ;;  %v1021_v25 = vld [vmem:[#allocation7 + $0x80] sm:$0xff] }
  0x1f   :  { %v1010_v12 = vld [vmem:[#allocation7 + $0x28] sm:$0xff]  ;;  %v1005_v29 = vld [vmem:[#allocation7] sm:$0xff] }
  0x20   :  { %250 = vmatpush.bf16.msra.mxu0 %v992_v13  ;;  %v1024_v13 = vld [vmem:[#allocation7 + $0x98] sm:$0xff]  ;;  %v1058_v35 = vld [vmem:[%s1328_s3] ss:$0 sm:$0xff] }
  0x21   :  { %317 = vmatpush.bf16.msra.mxu1 %v984_v14  ;;  %v1013_v14 = vld [vmem:[#allocation7 + $0x40] sm:$0xff] }
  0x22   :  { %401 = vmatpush.bf16.msra.mxu2 %v1000_v15  ;;  %546 = vmatpush.bf16.msra.mxu3 %v1017_v3  ;;  %v1009_v15 = vld [vmem:[#allocation7 + $0x20] sm:$0xff] }
  0x23   :  { %v1059_v62 = vld [vmem:[%s1329_s4] ss:$0 sm:$0xff]  ;;  %s1170_s4 = smov [#allocation8]  }
  0x24   :  { %251 = vmatpush.bf16.msra.mxu0 %v991_v17  ;;  %v1023_v17 = vld [vmem:[#allocation7 + $0x90] sm:$0xff]  ;;  %s741_s12 = sshll.u32 %s1170_s4, 4  ;;  %s742_s12 = int_to_ptr.vmem [resolvable:$true] %s741_s12 }
  0x25   :  { %318 = vmatpush.bf16.msra.mxu1 %v983_v18  ;;  %v1008_v18 = vld [vmem:[#allocation7 + $0x18] sm:$0xff] }
  0x26   :  { %402 = vmatpush.bf16.msra.mxu2 %v999_v19  ;;  %547 = vmatpush.bf16.msra.mxu3 %v1016_v5  ;;  %v1022_v19 = vld [vmem:[#allocation7 + $0x88] sm:$0xff] }
  0x28   :  { %252 = vmatpush.bf16.msra.mxu0 %v990_v27 }
  0x29   :  { %319 = vmatpush.bf16.msra.mxu1 %v982_v28  ;;  %v1006_v28 = vld [vmem:[#allocation7 + $0x8] sm:$0xff] }
  0x2a   :  { %403 = vmatpush.bf16.msra.mxu2 %v998_v33  ;;  %548 = vmatpush.bf16.msra.mxu3 %v1015_v8 }
  0x2c   :  { %253 = vmatpush.bf16.msra.mxu0 %v989_v38 }
  0x2d   :  { %320 = vmatpush.bf16.msra.mxu1 %v981_v39 }
  0x2e   :  { %404 = vmatpush.bf16.msra.mxu2 %v997_v42  ;;  %549 = vmatpush.bf16.msra.mxu3 %v1014_v11 }
  0x2f   :  { %254 = vmatmul.bf16.vlgmr.msra.gmra.mxu0 %v148_v45 }
  0x30   :  { %824 = vmatmul.msk.bf16.vlgmr.msra.gmra.mxu1 %vm1244_vm5, %v823_v46  ;;  %610 = vmatpush.bf16.msrb.mxu0 %v1012_v6 }
  0x31   :  { %864 = vmatmul.msk.bf16.vlgmr.msra.gmra.mxu2 %vm1249_vm6, %v863_v48  ;;  %694 = vmatpush.bf16.msrb.mxu1 %v1028_v2 }
  0x32   :  { %1033 = vmatpush.bf16.msrb.mxu2 %v1012_v6  ;;  %550 = vmatpush.bf16.msra.mxu3 %v1013_v14 }
  0x34   :  { %611 = vmatpush.bf16.msrb.mxu0 %v1011_v9 }
  0x35   :  { %695 = vmatpush.bf16.msrb.mxu1 %v1027_v4 }
  0x36   :  { %1034 = vmatpush.bf16.msrb.mxu2 %v1011_v9  ;;  %1041 = vmatpush.bf16.msrb.mxu3 %v1028_v2 }
  0x38   :  { %612 = vmatpush.bf16.msrb.mxu0 %v1010_v12 }
  0x39   :  { %696 = vmatpush.bf16.msrb.mxu1 %v1026_v7 }
  0x3a   :  { %1035 = vmatpush.bf16.msrb.mxu2 %v1010_v12  ;;  %1042 = vmatpush.bf16.msrb.mxu3 %v1027_v4 }
  0x3c   :  { %613 = vmatpush.bf16.msrb.mxu0 %v1009_v15 }
  0x3d   :  { %697 = vmatpush.bf16.msrb.mxu1 %v1025_v10 }
  0x3e   :  { %1036 = vmatpush.bf16.msrb.mxu2 %v1009_v15  ;;  %1043 = vmatpush.bf16.msrb.mxu3 %v1026_v7 }
  0x3f   :  { %259 = vmatmul.bf16.gmra.mxu0 %v149_v60 }
  0x40   :  { %828 = vmatmul.msk.bf16.gmra.mxu1 %vm1272_vm9, %v827_v61  ;;  %614 = vmatpush.bf16.msrb.mxu0 %v1008_v18 }
  0x41   :  { %868 = vmatmul.msk.bf16.gmra.mxu2 %vm1277_vm10, %v867_v63  ;;  %698 = vmatpush.bf16.msrb.mxu1 %v1024_v13 }
  0x42   :  { %1037 = vmatpush.bf16.msrb.mxu2 %v1008_v18  ;;  %1044 = vmatpush.bf16.msrb.mxu3 %v1025_v10 }
  0x44   :  { %615 = vmatpush.bf16.msrb.mxu0 %v1007_v20 }
  0x45   :  { %699 = vmatpush.bf16.msrb.mxu1 %v1023_v17 }
  0x46   :  { %1038 = vmatpush.bf16.msrb.mxu2 %v1007_v20  ;;  %1045 = vmatpush.bf16.msrb.mxu3 %v1024_v13 }
  0x48   :  { %616 = vmatpush.bf16.msrb.mxu0 %v1006_v28 }
  0x49   :  { %700 = vmatpush.bf16.msrb.mxu1 %v1022_v19 }
  0x4a   :  { %1039 = vmatpush.bf16.msrb.mxu2 %v1006_v28  ;;  %1046 = vmatpush.bf16.msrb.mxu3 %v1023_v17 }
  0x4c   :  { %617 = vmatpush.bf16.msrb.mxu0 %v1005_v29 }
  0x4d   :  { %701 = vmatpush.bf16.msrb.mxu1 %v1021_v25 }
  0x4e   :  { %1040 = vmatpush.bf16.msrb.mxu2 %v1005_v29  ;;  %1047 = vmatpush.bf16.msrb.mxu3 %v1022_v19 }
  0x52   :  { %1048 = vmatpush.bf16.msrb.mxu3 %v1021_v25 }
  0xac   :  { %v255_v26 = vpop.f32.mrf.mxu0 }
  0xad   :  { %v322_v27 = vpop.f32.mrf.mxu1 }
  0xae   :  { %v323_v31 = vadd.f32 %v322_v27, %v255_v26 }
  0xb4   :  { %v406_v30 = vpop.f32.mrf.mxu2  ;;  %v257_v32 = vpop.f32.mrf.mxu0 }
  0xb5   :  { %v324_v33 = vpop.f32.mrf.mxu1  ;;  %v416_v34 = vadd.f32 %v406_v30, %v323_v31 }
  0xb6   :  { %v325_v36 = vadd.f32 %v324_v33, %v257_v32 }
  0xb7   :  { %v424_v38 = vadd.f32 %v1058_v35, %v416_v34 }
  0xb9   :  { %v428_v43 = vmax.f32 %v424_v38, 0.0 }
  0xbb   :  { %v448_v56 = vrot.slane %v428_v43, 1  ;;  %v432_v6 = vrot.slane %v428_v43, 7 }
  0xbc   :  { %v408_v37 = vpop.f32.mrf.mxu2  ;;  %v260_v40 = vpop.f32.mrf.mxu0 }
  0xbd   :  { %v417_v39 = vadd.f32 %v408_v37, %v325_v36  ;;  %v327_v41 = vpop.f32.mrf.mxu1 }
  0xbe   :  { %v328_v45 = vadd.f32 %v327_v41, %v260_v40 }
  0xbf   :  { %v425_v42 = vadd.f32 %v1058_v35, %v417_v39 }
  0xc1   :  { %v429_v44 = vmax.f32 %v425_v42, 0.0 }
  0xc3   :  { %v446_v46 = vpack.c.bf16 %v429_v44, %v428_v43  ;;  %v449_v54 = vrot.slane %v429_v44, 1  ;;  %v433_v3 = vrot.slane %v429_v44, 7 }
  0xc4   :  { %v411_v48 = vpop.f32.mrf.mxu2  ;;  %v262_v52 = vpop.f32.mrf.mxu0 }
  0xc5   :  { %v418_v50 = vadd.f32 %v411_v48, %v328_v45  ;;  %551 = vmatmul.bf16.vlgmr.msra.gmra.mxu3 %v446_v46  ;;  %v329_v53 = vpop.f32.mrf.mxu1  ;;  %v454_v63 = vsel %vm154_vm1, %v448_v56, %v449_v54  ;;  %v438_v9 = vsel %vm137_vm0, %v432_v6, %v433_v3 }
  0xc6   :  { %v330_v58 = vadd.f32 %v329_v53, %v262_v52 }
  0xc7   :  { %v426_v51 = vadd.f32 %v1058_v35, %v418_v50 }
  0xc9   :  { %v430_v55 = vmax.f32 %v426_v51, 0.0 }
  0xcb   :  { %v450_v57 = vrot.slane %v430_v55, 1  ;;  %v434_v4 = vrot.slane %v430_v55, 7 }
  0xcc   :  { %v413_v59 = vpop.f32.mrf.mxu2 }
  0xcd   :  { %v419_v60 = vadd.f32 %v413_v59, %v330_v58  ;;  %v453_v61 = vsel %vm154_vm1, %v449_v54, %v450_v57  ;;  %v437_v49 = vsel %vm137_vm0, %v433_v3, %v434_v4 }
  0xce   :  { %v975_v1 = vpack.c.bf16 %v453_v61, %v454_v63 }
  0xcf   :  { %v427_v2 = vadd.f32 %v1058_v35, %v419_v60 }
  0xd0   :  { %976 = vmatmul.msk.bf16.vlgmr.msrb.gmra.mxu1 %vm1249_vm6, %v975_v1 }
  0xd1   :  { %v431_v5 = vmax.f32 %v427_v2, 0.0 }
  0xd3   :  { %v435_v7 = vrot.slane %v431_v5, 7  ;;  %v447_v8 = vpack.c.bf16 %v431_v5, %v430_v55  ;;  %v451_v14 = vrot.slane %v431_v5, 1 }
  0xd5   :  { %556 = vmatmul.bf16.gmra.mxu3 %v447_v8  ;;  %v439_v10 = vsel %vm137_vm0, %v435_v7, %v432_v6  ;;  %v436_v11 = vsel %vm137_vm0, %v434_v4, %v435_v7  ;;  %v452_v15 = vsel %vm154_vm1, %v450_v57, %v451_v14  ;;  %v455_v17 = vsel %vm154_vm1, %v451_v14, %v448_v56 }
  0xd6   :  { %v935_v12 = vpack.c.bf16 %v438_v9, %v439_v10  ;;  %v939_v13 = vpack.c.bf16 %v436_v11, %v437_v49  ;;  %v979_v18 = vpack.c.bf16 %v455_v17, %v452_v15 }
  0xd8   :  { %936 = vmatmul.msk.bf16.vlgmr.msrb.gmra.mxu0 %vm1244_vm5, %v935_v12  ;;  %940 = vmatmul.msk.bf16.vlgmr.msrb.gmra.mxu2 %vm1272_vm9, %v939_v13 }
  0xe5   :  { %980 = vmatmul.msk.bf16.vlgmr.msrb.gmra.mxu3 %vm1277_vm10, %v979_v18 }
 0x148   :  { %v552_v19 = vpop.f32.mrf.mxu3 }
 0x14d   :  { %v703_v25 = vpop.f32.mrf.mxu1 }
 0x150   :  { %v554_v20 = vpop.f32.mrf.mxu3 }
 0x155   :  { %v619_v26 = vpop.f32.mrf.mxu0  ;;  %v705_v33 = vpop.f32.mrf.mxu1 }
 0x156   :  { %v620_v47 = vadd.f32 %v619_v26, %v552_v19 }
 0x158   :  { %v713_v27 = vadd.f32 %v703_v25, %v620_v47  ;;  %v557_v28 = vpop.f32.mrf.mxu3 }
 0x15a   :  { %v721_v29 = vadd.f32 %v1059_v62, %v713_v27 }
 0x15b   :  { %v624_v35 = vpop.f32.mrf.mxu2 }
 0x15c   :  { %v725_v30 = vadd.f32 %v721_v29, %v1215_v21  ;;  %v625_v39 = vadd.f32 %v624_v35, %v557_v28 }
 0x15d   :  { %v621_v16 = vpop.f32.mrf.mxu0 }
 0x15e   :  { %v729_v31 = vmax.f32 %v725_v30, 0.0  ;;  %v622_v32 = vadd.f32 %v621_v16, %v554_v20 }
 0x160   :  { %733 = vst [vmem:[#allocation8] sm:$0xff] %v729_v31  ;;  %v714_v0 = vadd.f32 %v705_v33, %v622_v32  ;;  %v559_v34 = vpop.f32.mrf.mxu3 }
 0x162   :  { %v722_v36 = vadd.f32 %v1059_v62, %v714_v0 }
 0x163   :  { %v626_v43 = vpop.f32.mrf.mxu2 }
 0x164   :  { %v726_v37 = vadd.f32 %v722_v36, %v1217_v22  ;;  %v627_v44 = vadd.f32 %v626_v43, %v559_v34 }
 0x166   :  { %v730_v38 = vmax.f32 %v726_v37, 0.0 }
 0x168   :  { %734 = vst [vmem:[#allocation8 + $0x8] sm:$0xff] %v730_v38  ;;  %v708_v40 = vpop.f32.mrf.mxu3 }
 0x169   :  { %v715_v41 = vadd.f32 %v708_v40, %v625_v39 }
 0x16b   :  { %v723_v42 = vadd.f32 %v1059_v62, %v715_v41 }
 0x16d   :  { %v727_v21 = vadd.f32 %v723_v42, %v1221_v24 }
 0x16f   :  { %v731_v45 = vmax.f32 %v727_v21, 0.0 }
 0x170   :  { %v710_v46 = vpop.f32.mrf.mxu3 }
 0x171   :  { %735 = vst [vmem:[#allocation8 + $0x10] sm:$0xff] %v731_v45  ;;  %v716_v48 = vadd.f32 %v710_v46, %v627_v44 }
 0x173   :  { %v724_v50 = vadd.f32 %v1059_v62, %v716_v48 }
 0x175   :  { %v728_v22 = vadd.f32 %v724_v50, %v1219_v23 }
 0x177   :  { %v732_v51 = vmax.f32 %v728_v22, 0.0 }
 0x179   :  { %736 = vst [vmem:[#allocation8 + $0x18] sm:$0xff] %v732_v51 }
 0x17a   :  { %749 = dma.vmem_to_hbm [thread:$0]  %s742_s12, 512, %s744_s15, [#allocation4], %s1166_s30, %s1166_s30, %s1167_s6  }
 0x17b   :  { %1160 = dma.done.wait [#allocation4], 512  }
 0x17c   :  { %1161 = vsyncadd [#allocation4], 4294966784 }
 0x17d   :  { %754 = vsyncpa [#allocation3], 1 }
 0x17e   :  { %755 = vsyncpa [#allocation6], 1 }
 0x17f   :  { %756 = vsyncpa [#allocation4], 1 }

</bundles_post_ra>
